<compile_context>
chip_gen: v6e
topology: v6e:2x2x1
jax: 0.10.0
libtpu: 0.0.40
codegen_flags: <defaults>
</compile_context>

<pallas_src>
import enum
import math

import jax
import jax.numpy as jnp
from jax.experimental import pallas as pl
from jax.experimental.pallas import tpu as pltpu


class NodeTensorType(enum.Enum):
    gaussian = 0
    product = 1
    gated = 2
    categorical = 3


# ---- lightweight tensor-obj stand-ins (mirror the attributes used in forward) ----
class GaussianObj:
    def __init__(self, num_means):
        self.num_means = num_means
    def type(self):
        return NodeTensorType.gaussian

class GatedObj:
    def __init__(self, num_inputs, size):
        self.num_inputs = num_inputs
        self.size = size
    def type(self):
        return NodeTensorType.gated

class CategoricalObj:
    def __init__(self, domain, size):
        self.domain = domain
        self.size = size
    def type(self):
        return NodeTensorType.categorical

class ProductObj:
    def type(self):
        return NodeTensorType.product


def _round_up(n, m):
    return ((n + m - 1) // m) * m


def _cdiv(a, b):
    return -(-a // b)


def _vmem_bytes(shape, dtype):
    """VMEM footprint of a 2-D buffer with TPU sublane/lane padding."""
    itemsize = jnp.dtype(dtype).itemsize
    sub = (8 * 4) // itemsize           # 8 rows for 32-bit, 16 for 16-bit
    r = _round_up(shape[0], sub)
    c = _round_up(shape[1], 128)
    return r * c * itemsize


def _vmem_cap_bytes():
    """~85% of per-core VMEM; conservative 64 MiB (v7x per-TC) fallback."""
    try:
        cap = int(pltpu.get_tpu_info().vmem_capacity_bytes)
    except Exception:
        cap = 64 << 20
    return max(int(cap * 0.85), 32 << 20)


# -------------------------- Pallas kernel --------------------------
def _parameter_nn_kernel(x_ref, wc_ref, bc_ref, wp_ref, bp_ref, out_ref):
    # core linear: bf16 x bf16 -> f32 accumulation, bias add in f32
    bneck = jnp.dot(x_ref[...], wc_ref[...], preferred_element_type=jnp.float32)
    bneck = bneck + bc_ref[...]
    # all param-provider linears (concatenated): bf16 operands, f32 accumulation
    out = jnp.dot(bneck.astype(wp_ref.dtype), wp_ref[...],
                  preferred_element_type=jnp.float32)
    out_ref[...] = (out + bp_ref[...]).astype(out_ref.dtype)


def _select_tiles(b_pad, in_size, core_out, total_out_pad, tile_b,
                  x_dt, w_dt, b_dt, o_dt, cap):
    """Pick (nb, tb, nn, tn) so the double-buffered working set fits in `cap`."""
    # --- batch tiles: >=2 whenever b_pad > tile_b (v7x dual-TC sharding) ---
    if b_pad <= tile_b:
        nb, tb = 1, b_pad
    else:
        nb = max(2, _cdiv(b_pad, tile_b))
        tb = _round_up(_cdiv(b_pad, nb), 16)
        nb = _cdiv(b_pad, tb)

    def footprint(tb_, tn_, nn_):
        nbuf_w = 1 if nn_ == 1 else 2   # resident weights -> single buffer
        return (2 * _vmem_bytes((tb_, in_size), x_dt)
                + _vmem_bytes((in_size, core_out), w_dt)
                + _vmem_bytes((1, core_out), b_dt)
                + nbuf_w * _vmem_bytes((core_out, tn_), w_dt)
                + nbuf_w * _vmem_bytes((1, tn_), b_dt)
                + 2 * _vmem_bytes((tb_, tn_), o_dt))

    while True:
        nn, tn = 1, total_out_pad
        while footprint(tb, tn, nn) > cap and tn > 128:
            nn += 1
            tn = _round_up(_cdiv(total_out_pad, nn), 128)
        nn = _cdiv(total_out_pad, tn)
        if footprint(tb, tn, nn) <= cap or tb <= 16:
            break
        tb = max(16, _round_up(tb // 2, 16))   # last resort: shrink batch tile
        nb = _cdiv(b_pad, tb)
    return nb, tb, nn, tn, footprint(tb, tn, nn)


def parameter_nn_pallas(x, wc_t, bc_row, wp_t, bp_row, *,
                        out_dtype=jnp.float32, tile_b=1024, vmem_cap_bytes=None):
    """Fused core + all param-provider linears.

    x:      (B, input_size)             any float (cast to bf16 for the MXU)
    wc_t:   (input_size, core_out)      bf16 (pre-transposed)
    bc_row: (1, core_out)               f32
    wp_t:   (core_out, total_out_pad)   bf16 (pre-transposed, out dim padded to 128-mult)
    bp_row: (1, total_out_pad)          f32
    Returns the PADDED (b_need, n_need) slab in `out_dtype`; caller slices per head
    (avoids an extra full-slab HBM copy).
    """
    B, in_size = x.shape
    core_out = wc_t.shape[1]
    total_out_pad = wp_t.shape[1]

    x = x.astype(jnp.bfloat16)

    cap_hw = _vmem_cap_bytes()
    cap_sel = int(vmem_cap_bytes) if vmem_cap_bytes else cap_hw

    b_pad = _round_up(B, 16)
    nb, tb, nn, tn, fp = _select_tiles(
        b_pad, in_size, core_out, total_out_pad, tile_b,
        x.dtype, wc_t.dtype, bc_row.dtype, out_dtype, cap_sel)

    b_need = nb * tb
    n_need = nn * tn
    if b_need != B:
        x = jnp.pad(x, ((0, b_need - B), (0, 0)))
    if n_need != total_out_pad:
        wp_t = jnp.pad(wp_t, ((0, 0), (0, n_need - total_out_pad)))
        bp_row = jnp.pad(bp_row, ((0, 0), (0, n_need - total_out_pad)))

    # Computed VMEM budget: footprint + headroom, capped at the per-core capacity.
    vmem_limit = min(cap_hw, max(int(fp * 1.25), 32 << 20))

    # Advisory cost estimate for XLA scheduling around the custom call.
    flops = 2 * b_need * (in_size * core_out + core_out * n_need)
    bytes_accessed = (nn * x.size * x.dtype.itemsize
                      + wc_t.size * wc_t.dtype.itemsize
                      + bc_row.size * bc_row.dtype.itemsize
                      + wp_t.size * wp_t.dtype.itemsize
                      + bp_row.size * bp_row.dtype.itemsize
                      + b_need * n_need * jnp.dtype(out_dtype).itemsize)

    # Grid-invariant operands: single-buffered (no wasted double-buffer VMEM).
    const_mode = pl.Buffered(1)
    wp_mode = pl.Buffered(1) if nn == 1 else pl.Buffered(2)

    out = pl.pallas_call(
        _parameter_nn_kernel,
        out_shape=jax.ShapeDtypeStruct((b_need, n_need), out_dtype),
        grid=(nn, nb),   # column axis outer (wp streamed once), batch inner
        in_specs=[
            pl.BlockSpec((tb, in_size), lambda j, i: (i, 0)),
            pl.BlockSpec((in_size, core_out), lambda j, i: (0, 0),
                         pipeline_mode=const_mode),
            pl.BlockSpec((1, core_out), lambda j, i: (0, 0),
                         pipeline_mode=const_mode),
            pl.BlockSpec((core_out, tn), lambda j, i: (0, j),
                         pipeline_mode=wp_mode),
            pl.BlockSpec((1, tn), lambda j, i: (0, j),
                         pipeline_mode=wp_mode),
        ],
        out_specs=pl.BlockSpec((tb, tn), lambda j, i: (i, j)),
        compiler_params=pltpu.CompilerParams(
            dimension_semantics=("parallel", "parallel"),
            vmem_limit_bytes=vmem_limit),
        cost_estimate=pl.CostEstimate(flops=int(flops), transcendentals=0,
                                      bytes_accessed=int(bytes_accessed)),
    )(x, wc_t, bc_row, wp_t, bp_row)
    return out   # padded slab


# -------------------------- parameter setup (deterministic) --------------------------
def linear_init(key, out_features, in_features):
    # mimic torch.nn.Linear default init: U(-1/sqrt(fan_in), 1/sqrt(fan_in))
    kw, kb = jax.random.split(key)
    bound = 1.0 / math.sqrt(in_features)
    w = jax.random.uniform(kw, (out_features, in_features), jnp.float32, -bound, bound)
    b = jax.random.uniform(kb, (out_features,), jnp.float32, -bound, bound)
    return w, b


def build_parameter_nn(key, tensor_obj_layers, input_size, core_output_size):
    """Returns (params_dict, ordered list of (obj, out_size, offset)).

    Weights are stored pre-transposed ([K, N]) in bf16; the concatenated head
    output dim is zero-padded to a multiple of 128 (lane-dense stores).
    Biases stay f32 (bias adds + epilogue run in f32).
    """
    k_core, k_heads = jax.random.split(key)
    wc, bc = linear_init(k_core, core_output_size, input_size)

    head_meta = []  # (obj, out_size)
    for layer in tensor_obj_layers:
        for obj in layer:
            t = obj.type()
            if t == NodeTensorType.gaussian:
                out_size = obj.num_means
            elif t == NodeTensorType.gated:
                out_size = obj.num_inputs * obj.size
            elif t == NodeTensorType.categorical:
                out_size = len(obj.domain) * obj.size
            else:
                out_size = None  # product -> no param provider
            head_meta.append((obj, out_size))

    ws, bs, offsets = [], [], []
    offset = 0
    keys = jax.random.split(k_heads, max(1, len(head_meta)))
    for (obj, out_size), hk in zip(head_meta, keys):
        if out_size is None:
            offsets.append(None)
            continue
        w, b = linear_init(hk, out_size, core_output_size)
        ws.append(w)
        bs.append(b)
        offsets.append(offset)
        offset += out_size

    total_out = offset
    total_out_pad = max(_round_up(max(total_out, 1), 128), 128)

    wc_t = jnp.asarray(wc.T, jnp.bfloat16)                       # (input_size, core_out)
    bc_row = jnp.asarray(bc.reshape(1, -1), jnp.float32)         # (1, core_out)
    wp_t = jnp.zeros((core_output_size, total_out_pad), jnp.bfloat16)
    bp_row = jnp.zeros((1, total_out_pad), jnp.float32)
    if ws:  # guard: all-product config has no param providers
        wp_cat = jnp.concatenate(ws, axis=0)                     # (total_out, core_out)
        bp_cat = jnp.concatenate(bs, axis=0)                     # (total_out,)
        wp_t = wp_t.at[:, :total_out].set(wp_cat.T.astype(jnp.bfloat16))
        bp_row = bp_row.at[:, :total_out].set(bp_cat)

    params = dict(wc_t=wc_t, bc_row=bc_row, wp_t=wp_t, bp_row=bp_row,
                  total_out=total_out)
    heads = [(obj, out_size, off) for (obj, out_size), off in zip(head_meta, offsets)]
    return params, heads


def _split_heads(all_out, heads, batch):
    """Per-head slice + reshape (matches the torch .view() calls exactly)."""
    outputs = {}
    for obj, out_size, off in heads:
        t = obj.type()
        if out_size is None:
            assert t == NodeTensorType.product
            outputs[obj] = None
            continue
        p = all_out[:batch, off:off + out_size]
        if t == NodeTensorType.gaussian:
            p = p.reshape(-1, out_size)
        elif t == NodeTensorType.gated:
            p = p.reshape(-1, obj.num_inputs, obj.size)
        elif t == NodeTensorType.categorical:
            p = p.reshape(-1, obj.size, len(obj.domain))
        outputs[obj] = p
    return outputs


def parameter_nn_forward(x, params, heads, *, out_dtype=jnp.float32,
                         tile_b=1024, vmem_cap_bytes=None):
    """Full ParameterNN.forward: returns {obj: reshaped params or None}."""
    if params["total_out"] == 0:
        # every node is a product node -> no param providers at all
        return {obj: None for obj, _, _ in heads}
    all_out = parameter_nn_pallas(x, params["wc_t"], params["bc_row"],
                                  params["wp_t"], params["bp_row"],
                                  out_dtype=out_dtype, tile_b=tile_b,
                                  vmem_cap_bytes=vmem_cap_bytes)
    return _split_heads(all_out, heads, x.shape[0])


# -------------------------- reference (pure JAX) for verification --------------------------
def reference_forward(x, params, heads):
    """Pure-JAX reference emulating the kernel's bf16-operand / f32-accumulate math."""
    if params["total_out"] == 0:
        return {obj: None for obj, _, _ in heads}
    xb = x.astype(jnp.bfloat16)
    bneck = jnp.dot(xb, params["wc_t"],
                    preferred_element_type=jnp.float32) + params["bc_row"]
    all_out = jnp.dot(bneck.astype(jnp.bfloat16), params["wp_t"],
                      preferred_element_type=jnp.float32) + params["bp_row"]
    return _split_heads(all_out, heads, x.shape[0])


if __name__ == "__main__":
    key = jax.random.PRNGKey(0)
    k_param, k_x, k_param2, k_x2 = jax.random.split(key, 4)

    # ---------- test 1: small config (single-block grid, f32 output) ----------
    batch = 2
    input_size = 32
    core_output_size = 32
    tensor_obj_layers = [[
        GaussianObj(num_means=16),
        GatedObj(num_inputs=4, size=4),
        CategoricalObj(domain=(0, 1, 2, 3), size=4),
        ProductObj(),
    ]]
    params, heads = build_parameter_nn(k_param, tensor_obj_layers,
                                       input_size, core_output_size)
    x = jax.random.normal(k_x, (batch, input_size), jnp.float32)

    outs = parameter_nn_forward(x, params, heads)
    jax.block_until_ready([v for v in outs.values() if v is not None])

    refs = reference_forward(x, params, heads)
    for obj, out_size, off in heads:
        o, r = outs[obj], refs[obj]
        if out_size is None:
            assert o is None
            continue
        assert o.shape == r.shape, (o.shape, r.shape)
        assert jnp.allclose(o, r, atol=1e-2, rtol=1e-2)

    # ---------- test 2: exercise the tiled grid (nb>1 and nn>1 via a small
    # forced VMEM tiling budget) with bf16 output ----------
    batch2 = 300
    layers2 = [[
        GaussianObj(num_means=150),
        GatedObj(num_inputs=8, size=8),
        CategoricalObj(domain=(0, 1, 2, 3, 4), size=10),
        ProductObj(),
    ]]
    params2, heads2 = build_parameter_nn(k_param2, layers2,
                                         input_size, core_output_size)
    x2 = jax.random.normal(k_x2, (batch2, input_size), jnp.float32)

    outs2 = parameter_nn_forward(x2, params2, heads2, out_dtype=jnp.bfloat16,
                                 tile_b=128, vmem_cap_bytes=160 << 10)
    jax.block_until_ready([v for v in outs2.values() if v is not None])

    refs2 = reference_forward(x2, params2, heads2)
    for obj, out_size, off in heads2:
        o, r = outs2[obj], refs2[obj]
        if out_size is None:
            assert o is None
            continue
        assert o.shape == r.shape, (o.shape, r.shape)
        assert jnp.allclose(o.astype(jnp.float32), r, atol=5e-2, rtol=5e-2)

    print("KERNEL_OK")
</pallas_src>

<mosaic_0001>
module attributes {stable_mosaic.version = 11 : i64} {
  func.func @_parameter_nn_kernel(%arg0: i32, %arg1: i32, %arg2: memref<16x32xbf16, #tpu.memory_space<vmem>>, %arg3: memref<32x32xbf16, #tpu.memory_space<vmem>>, %arg4: memref<1x32xf32, #tpu.memory_space<vmem>>, %arg5: memref<32x128xbf16, #tpu.memory_space<vmem>>, %arg6: memref<1x128xf32, #tpu.memory_space<vmem>>, %arg7: memref<16x128xf32, #tpu.memory_space<vmem>>) attributes {dimension_semantics = [#tpu.dimension_semantics<parallel>, #tpu.dimension_semantics<parallel>], iteration_bounds = array<i64: 1, 1>, scalar_prefetch = 0 : i64, scratch_operands = 0 : i64, tpu.core_type = #tpu.core_type<tc>, window_params = [{transform_indices = @transform_0, window_bounds = array<i64: 16, 32>}, {pipeline_mode = #tpu.pipeline_mode<synchronous>, transform_indices = @transform_1, window_bounds = array<i64: 32, 32>}, {pipeline_mode = #tpu.pipeline_mode<synchronous>, transform_indices = @transform_2, window_bounds = array<i64: 1, 32>}, {pipeline_mode = #tpu.pipeline_mode<synchronous>, transform_indices = @transform_3, window_bounds = array<i64: 32, 128>}, {pipeline_mode = #tpu.pipeline_mode<synchronous>, transform_indices = @transform_4, window_bounds = array<i64: 1, 128>}, {transform_indices = @transform_5, window_bounds = array<i64: 16, 128>}]} {
    %c0 = arith.constant 0 : index
    %c0_0 = arith.constant 0 : index
    %0 = vector.load %arg2[%c0, %c0_0] : memref<16x32xbf16, #tpu.memory_space<vmem>>, vector<16x32xbf16>
    %c0_1 = arith.constant 0 : index
    %c0_2 = arith.constant 0 : index
    %1 = vector.load %arg3[%c0_1, %c0_2] : memref<32x32xbf16, #tpu.memory_space<vmem>>, vector<32x32xbf16>
    %cst = arith.constant dense<0.000000e+00> : vector<16x32xf32>
    %2 = tpu.matmul %0, %1, %cst {dimension_numbers = #tpu.dot_dimension_numbers<[1], [0], [0], [1], [0, 0, 1, 1], [], []>} : vector<16x32xbf16>, vector<32x32xbf16>, vector<16x32xf32> -> vector<16x32xf32>
    %c0_3 = arith.constant 0 : index
    %c0_4 = arith.constant 0 : index
    %3 = vector.load %arg4[%c0_3, %c0_4] : memref<1x32xf32, #tpu.memory_space<vmem>>, vector<1x32xf32>
    %4 = vector.broadcast %3 : vector<1x32xf32> to vector<16x32xf32>
    %5 = arith.addf %2, %4 : vector<16x32xf32>
    %6 = arith.truncf %5 : vector<16x32xf32> to vector<16x32xbf16>
    %c0_5 = arith.constant 0 : index
    %c0_6 = arith.constant 0 : index
    %7 = vector.load %arg5[%c0_5, %c0_6] : memref<32x128xbf16, #tpu.memory_space<vmem>>, vector<32x128xbf16>
    %cst_7 = arith.constant dense<0.000000e+00> : vector<16x128xf32>
    %8 = tpu.matmul %6, %7, %cst_7 {dimension_numbers = #tpu.dot_dimension_numbers<[1], [0], [0], [1], [0, 0, 1, 1], [], []>} : vector<16x32xbf16>, vector<32x128xbf16>, vector<16x128xf32> -> vector<16x128xf32>
    %c0_8 = arith.constant 0 : index
    %c0_9 = arith.constant 0 : index
    %9 = vector.load %arg6[%c0_8, %c0_9] : memref<1x128xf32, #tpu.memory_space<vmem>>, vector<1x128xf32>
    %10 = vector.broadcast %9 : vector<1x128xf32> to vector<16x128xf32>
    %11 = arith.addf %8, %10 : vector<16x128xf32>
    %c0_10 = arith.constant 0 : index
    %c0_11 = arith.constant 0 : index
    %12 = vector.load %arg7[%c0_10, %c0_11] : memref<16x128xf32, #tpu.memory_space<vmem>>, vector<16x128xf32>
    tpu.vector_store %arg7[%c0_10, %c0_11], %11 {strides = array<i32>} : memref<16x128xf32, #tpu.memory_space<vmem>>, vector<16x128xf32>,
    return
  }
  func.func @transform_0(%arg0: i32, %arg1: i32) -> (i32, i32) {
    %c0_i32 = arith.constant 0 : i32
    %c0_i32_0 = arith.constant 0 : i32
    return %arg1, %c0_i32 : i32, i32
  }
  func.func @transform_1(%arg0: i32, %arg1: i32) -> (i32, i32) {
    %c0_i32 = arith.constant 0 : i32
    %c0_i32_0 = arith.constant 0 : i32
    %c0_i32_1 = arith.constant 0 : i32
    return %c0_i32, %c0_i32_0 : i32, i32
  }
  func.func @transform_2(%arg0: i32, %arg1: i32) -> (i32, i32) {
    %c0_i32 = arith.constant 0 : i32
    %c0_i32_0 = arith.constant 0 : i32
    %c0_i32_1 = arith.constant 0 : i32
    return %c0_i32, %c0_i32_0 : i32, i32
  }
  func.func @transform_3(%arg0: i32, %arg1: i32) -> (i32, i32) {
    %c0_i32 = arith.constant 0 : i32
    %c0_i32_0 = arith.constant 0 : i32
    return %c0_i32, %arg0 : i32, i32
  }
  func.func @transform_4(%arg0: i32, %arg1: i32) -> (i32, i32) {
    %c0_i32 = arith.constant 0 : i32
    %c0_i32_0 = arith.constant 0 : i32
    return %c0_i32, %arg0 : i32, i32
  }
  func.func @transform_5(%arg0: i32, %arg1: i32) -> (i32, i32) {
    %c0_i32 = arith.constant 0 : i32
    return %arg1, %arg0 : i32, i32
  }
}

</mosaic_0001>

<bundles_post_ra>
// kernel: tpu_custom_call.1
= control target key start
LH: loop header
LB: loop body
LE: loop exit
PB: predicated region body
PF: predicated region fallthrough
CT: control target
= control target key end

     0   :  { %10 = vsyncpa [#allocation3], 0  ;;  %s416_s0 = inlined_call_operand.hbm [shape: bf16[16,32], index: 0, kind: input, shape index: {}]   ;;  %s417_s1 = inlined_call_operand.hbm [shape: bf16[32,32], index: 1, kind: input, shape index: {}]   ;;  %s418_s2 = inlined_call_operand.vmem [shape: f32[1,32], index: 2, kind: input, shape index: {}]   ;;  %s419_s3 = inlined_call_operand.hbm [shape: bf16[32,128], index: 3, kind: input, shape index: {}]   ;;  %s420_s4 = inlined_call_operand.vmem [shape: f32[1,128], index: 4, kind: input, shape index: {}]   ;;  %s421_s5 = inlined_call_operand.hbm [shape: f32[16,128], index: 5, kind: output, shape index: {}]  }
   0x1   :  { %11 = vsyncpa [#allocation6], 0 }
   0x2   :  { %12 = vsyncpa [#allocation4], 0  ;;  %s358_s18 = smov [#allocation5]   ;;  %s359_s20 = smov [#allocation2]  }
   0x3   :  { %s30_s19 = sshll.u32 %s358_s18, 4  ;;  %s18_s21 = sshll.u32 %s359_s20, 4  ;;  %s31_s19 = int_to_ptr.vmem [resolvable:$true] %s30_s19  ;;  %s19_s21 = int_to_ptr.vmem [resolvable:$true] %s18_s21 }
   0x4   :  { %s280_s22 = scalar_lea.vmem %s31_s19, 256  ;;  %p285_p1 = scmp.lt.s32.totalorder %s31_s19, %s31_s19 }
   0x5   :  { %p281_p0 = scmp.ne.s32.totalorder %s31_s19, %s280_s22  ;;  %p286_p2 = scmp.lt.s32.totalorder %s280_s22, %s280_s22 }
   0x7   :  { %p287_p3 = por %p286_p2, %p285_p1 }
   0x9   :  { %p288_p4 = pnand %p287_p3, %p281_p0 }
   0xb   :  { %291 = shalt.err (!%p288_p4)
}
   0xc   :  { %s360_s23 = smov 64   ;;  %s361_s24 = smov 4  }
   0xd   :  { %36 = dma.hbm_to_vmem [thread:$0]  %s417_s1, 256, %s31_s19, [#allocation6], %s360_s23, %s360_s23, %s361_s24  }
   0xe   :  { %s300_s27 = scalar_lea.vmem %s19_s21, 128  ;;  %p305_p6 = scmp.lt.s32.totalorder %s19_s21, %s19_s21 }
   0xf   :  { %p301_p5 = scmp.ne.s32.totalorder %s19_s21, %s300_s27  ;;  %p306_p7 = scmp.lt.s32.totalorder %s300_s27, %s300_s27 }
  0x11   :  { %p307_p8 = por %p306_p7, %p305_p6 }
  0x13   :  { %p308_p9 = pnand %p307_p8, %p301_p5 }
  0x15   :  { %311 = shalt.err (!%p308_p9)
}
  0x16   :  { %24 = dma.hbm_to_vmem [thread:$0]  %s416_s0, 128, %s19_s21, [#allocation3], %s360_s23, %s360_s23, %s361_s24  }
  0x17   :  { %s362_s30 = smov [#allocation7]  }
  0x18   :  { %s44_s6 = sshll.u32 %s362_s30, 4  ;;  %s45_s6 = int_to_ptr.vmem [resolvable:$true] %s44_s6 }
  0x19   :  { %s320_s7 = scalar_lea.vmem %s45_s6, 256  ;;  %p325_p11 = scmp.lt.s32.totalorder %s45_s6, %s45_s6 }
  0x1a   :  { %p321_p10 = scmp.ne.s32.totalorder %s45_s6, %s320_s7  ;;  %p326_p12 = scmp.lt.s32.totalorder %s320_s7, %s320_s7 }
  0x1c   :  { %p327_p13 = por %p326_p12, %p325_p11 }
  0x1e   :  { %p328_p0 = pnand %p327_p13, %p321_p10 }
  0x20   :  { %331 = shalt.err (!%p328_p0)
}
  0x21   :  { %50 = dma.hbm_to_vmem [thread:$0]  %s419_s3, 256, %s45_s6, [#allocation6], %s360_s23, %s360_s23, %s361_s24  }
  0x22   :  { %352 = dma.done.wait [#allocation3], 128  }
  0x23   :  { %353 = vsyncadd [#allocation3], 4294967168 }
  0x24   :  { %354 = dma.done.wait [#allocation6], 512  }
  0x25   :  { %355 = vsyncadd [#allocation6], 4294966784  ;;  %v363_v0 = vmov 0.0   ;;  %vm364_vm0 = vmmov 0   ;;  %v267_v1 = vld [vmem:[#allocation5 + $0x8] sm:$0xff]   ;;  %v268_v2 = vld [vmem:[#allocation5] sm:$0xff]  }
  0x26   :  { %241 = vmatprep.subr.bf16.mxu0 %v363_v0  ;;  %245 = vmatprep.mubr.msk.bf16.mxu0 %vm364_vm0, %v363_v0  ;;  %v269_v3 = vld [vmem:[#allocation2] sm:$0xff]   ;;  %vm93_vm1 = vcmask 261120   ;;  %v271_v5 = vld [vmem:[#allocation7] sm:$0xff]   ;;  %s365_s11 = smov [#allocation8]  }
  0x27   :  { %249 = vmatprep.subr.bf16.mxu1 %v363_v0  ;;  %253 = vmatprep.mubr.msk.bf16.mxu1 %vm364_vm0, %v363_v0  ;;  %v270_v4 = vld [vmem:[#allocation7 + $0x8] sm:$0xff]   ;;  %s213_s12 = sshll.u32 %s365_s11, 4  ;;  %s214_s12 = int_to_ptr.vmem [resolvable:$true] %s213_s12 }
  0x28   :  { %242 = vmatpush3.bf16.msra.mxu0 %v267_v1  ;;  %250 = vmatpush3.bf16.msra.mxu1 %v270_v4  ;;  %v226_v7 = vld [vmem:[%s418_s2] ss:$0 sm:$0xff]  ;;  %s332_s2 = scalar_lea.vmem %s214_s12, 256  ;;  %p337_p2 = scmp.lt.s32.totalorder %s214_s12, %s214_s12 }
  0x29   :  { %243 = vmatprep.subr.bf16.mxu0 %v363_v0  ;;  %251 = vmatprep.subr.bf16.mxu1 %v363_v0  ;;  %v231_v14 = vld [vmem:[%s420_s4] ss:$0 sm:$0xff]  ;;  %p333_p1 = scmp.ne.s32.totalorder %s214_s12, %s332_s2  ;;  %p338_p3 = scmp.lt.s32.totalorder %s332_s2, %s332_s2 }
  0x2b   :  { %p339_p4 = por %p338_p3, %p337_p2 }
  0x2c   :  { %244 = vmatpush3.bf16.msra.mxu0 %v268_v2  ;;  %252 = vmatpush3.bf16.msra.mxu1 %v271_v5 }
  0x2d   :  { %p340_p5 = pnand %p339_p4, %p333_p1 }
  0x2f   :  { %246 = vmatmul.mubr.msk.bf16.vlgmr.msra.gmra.mxu0 %vm93_vm1, %v269_v3 }
  0xef   :  { %v131_v6 = vpop.f32.mrf.mxu0 }
  0xf0   :  { %v132_v10 = vadd.f32 %v226_v7, %v131_v6 }
  0xf1   :  { %v247_v8 = vpop.f32.mrf.mxu0 }
  0xf3   :  { %v134_v9 = vpop.f32.mrf.mxu0 }
  0xf4   :  { %v135_v11 = vadd.f32 %v226_v7, %v134_v9 }
  0xf5   :  { %v248_v12 = vpop.f32.mrf.mxu0 }
  0xf6   :  { %v138_v13 = vpack.c.bf16 %v135_v11, %v132_v10 }
  0xf8   :  { %254 = vmatmul.mubr.msk.bf16.vlgmr.msra.gmra.mxu1 %vm93_vm1, %v138_v13 }
 0x1b8   :  { %v199_v15 = vpop.f32.mrf.mxu1 }
 0x1b9   :  { %v200_v16 = vadd.f32 %v231_v14, %v199_v15 }
 0x1ba   :  { %v255_v17 = vpop.f32.mrf.mxu1 }
 0x1bb   :  { %206 = vst [vmem:[#allocation8] sm:$0xff] %v200_v16 }
 0x1bc   :  { %v202_v18 = vpop.f32.mrf.mxu1 }
 0x1bd   :  { %v203_v19 = vadd.f32 %v231_v14, %v202_v18 }
 0x1be   :  { %v256_v20 = vpop.f32.mrf.mxu1 }
 0x1bf   :  { %207 = vst [vmem:[#allocation8 + $0x8] sm:$0xff] %v203_v19 }
 0x1c0   :  { %343 = shalt.err (!%p340_p5)
}
 0x1c1   :  { %s366_s13 = smov 128   ;;  %s367_s4 = smov 8  }
 0x1c2   :  { %219 = dma.vmem_to_hbm [thread:$0]  %s214_s12, 256, %s421_s5, [#allocation4], %s366_s13, %s366_s13, %s367_s4  }
 0x1c3   :  { %356 = dma.done.wait [#allocation4], 256  }
 0x1c4   :  { %357 = vsyncadd [#allocation4], 4294967040 }
 0x1c5   :  { %223 = vsyncpa [#allocation3], 1 }
 0x1c6   :  { %224 = vsyncpa [#allocation6], 1 }
 0x1c7   :  { %225 = vsyncpa [#allocation4], 1 }

</bundles_post_ra>
